<compile_context>
chip_gen: v5e
topology: v5e:2x2
jax: 0.10.0
libtpu: 0.0.40
codegen_flags: <defaults>
</compile_context>

<pallas_src>
import math

import jax
import jax.numpy as jnp
from jax.experimental import pallas as pl
from jax.experimental.pallas import tpu as pltpu

LANE = 128


def _round_up(n, m):
    return ((n + m - 1) // m) * m


def _choose_tile(batch, tile_cap=1024):
    """Batch tile: multiple of 8 sublanes, minimal padding, capped so per-step VMEM stays
    small; for large batches produces >= 2 grid steps (lets v7x shard across both TCs)."""
    bt = _round_up(max(batch, 1), 8)
    if bt <= tile_cap:
        return bt
    steps = max(2, -(-bt // tile_cap))
    return _round_up(-(-bt // steps), 8)


def _normdist_mlp_kernel(x_ref, w1_ref, b1_ref, w2_ref, b2_ref, w3_ref, b3_ref, o_ref):
    # x: (TILE_B, F_in) f32 (cast to bf16 here, not in the wrapper); weights bf16 (in, out),
    # zero-padded to 128-wide lane-dense outputs; biases f32 (1, 128*).
    # All accumulation in f32 on the MXU; only the first f_out columns are stored.
    x = x_ref[...].astype(jnp.bfloat16)
    h1 = jnp.dot(x, w1_ref[...], preferred_element_type=jnp.float32) + b1_ref[...]
    h1 = jnp.maximum(h1, 0.0)                                   # relu(fc1), f32
    h2 = jnp.dot(h1.astype(jnp.bfloat16), w2_ref[...],
                 preferred_element_type=jnp.float32) + b2_ref[...]
    h2 = jnp.maximum(h2, 0.0)                                   # relu(fc2), f32
    y = jnp.dot(h2.astype(jnp.bfloat16), w3_ref[...],
                preferred_element_type=jnp.float32) + b3_ref[...]
    # Narrow store: only the real output features go back to HBM.
    o_ref[...] = jnp.tanh(y[:, : o_ref.shape[1]])


def prepare_params(params):
    """One-time parameter prep: pad hidden/output widths to 128 lanes, cast weights to bf16,
    reshape biases to (1, lanes) f32 rows. Do this once, not per forward call."""
    f_in, h0 = params["w1"].shape
    h1 = params["w2"].shape[1]
    f_out = params["w3"].shape[1]
    h0p = _round_up(h0, LANE)
    h1p = _round_up(h1, LANE)
    fop = _round_up(f_out, LANE)

    def pad_w(w, rp, cp):
        r, c = w.shape
        return jnp.pad(w.astype(jnp.float32), ((0, rp - r), (0, cp - c))).astype(jnp.bfloat16)

    def pad_b(b, cp):
        b = b.astype(jnp.float32).reshape(1, -1)
        return jnp.pad(b, ((0, 0), (0, cp - b.shape[1])))

    return {
        "w1": pad_w(params["w1"], f_in, h0p), "b1": pad_b(params["b1"], h0p),
        "w2": pad_w(params["w2"], h0p, h1p), "b2": pad_b(params["b2"], h1p),
        "w3": pad_w(params["w3"], h1p, fop), "b3": pad_b(params["b3"], fop),
        "log_std": params["log_std"],
        "f_in": f_in, "f_out": f_out,
    }


def normdist_net_forward(x, prepped, *, tile_cap=1024):
    """Forward pass of NormDistNet.

    x: any shape; flattened to (-1, input_features) like x.view(-1, F).float().
    prepped: output of prepare_params().
    Returns (tanh(fc3(relu(fc2(relu(fc1(x)))))), log_std).
    """
    f_in = prepped["f_in"]
    f_out = prepped["f_out"]
    w1, b1 = prepped["w1"], prepped["b1"]
    w2, b2 = prepped["w2"], prepped["b2"]
    w3, b3 = prepped["w3"], prepped["b3"]
    h0p, h1p, fop = w1.shape[1], w2.shape[1], w3.shape[1]

    x2d = x.reshape(-1, f_in).astype(jnp.float32)
    batch = x2d.shape[0]

    tile = _choose_tile(batch, tile_cap)
    batch_p = _round_up(batch, tile)
    if batch_p != batch:
        x2d = jnp.pad(x2d, ((0, batch_p - batch), (0, 0)))  # small tail pad (< 1 tile)

    grid = (batch_p // tile,)

    def resident(shape):
        # Constant block index -> fetched once, stays resident in VMEM across grid steps.
        return pl.BlockSpec(shape, lambda i: (0, 0))

    flops = 2 * batch_p * (f_in * h0p + h0p * h1p + h1p * fop)
    bytes_accessed = (
        x2d.size * 4                                  # f32 input stream
        + (w1.size + w2.size + w3.size) * 2           # bf16 resident weights (read once)
        + (b1.size + b2.size + b3.size) * 4           # f32 biases
        + batch_p * f_out * 4                         # narrow f32 output stream
    )

    y = pl.pallas_call(
        _normdist_mlp_kernel,
        out_shape=jax.ShapeDtypeStruct((batch_p, f_out), jnp.float32),
        grid=grid,
        in_specs=[
            pl.BlockSpec((tile, f_in), lambda i: (i, 0)),   # x stream, pipelined over batch
            resident((f_in, h0p)), resident((1, h0p)),
            resident((h0p, h1p)), resident((1, h1p)),
            resident((h1p, fop)), resident((1, fop)),
        ],
        out_specs=pl.BlockSpec((tile, f_out), lambda i: (i, 0)),
        compiler_params=pltpu.CompilerParams(dimension_semantics=("parallel",)),
        cost_estimate=pl.CostEstimate(
            flops=flops,
            transcendentals=batch_p * f_out,
            bytes_accessed=bytes_accessed,
        ),
    )(x2d, w1, b1, w2, b2, w3, b3)

    mean = y[:batch]
    return mean, prepped["log_std"]


def init_params(key, input_features, output_features, hidden_units, std_init):
    """Parameter init matching the module: fc1/fc2 kaiming-uniform (relu gain, fan_in),
    fc3 + all biases use PyTorch nn.Linear defaults (bound = 1/sqrt(fan_in))."""
    k = jax.random.split(key, 6)

    def kaiming_uniform(kk, fan_in, fan_out):
        bound = math.sqrt(2.0) * math.sqrt(3.0 / fan_in)  # relu gain
        return jax.random.uniform(kk, (fan_in, fan_out), jnp.float32, -bound, bound)

    def default_linear_w(kk, fan_in, fan_out):
        bound = 1.0 / math.sqrt(fan_in)
        return jax.random.uniform(kk, (fan_in, fan_out), jnp.float32, -bound, bound)

    def bias(kk, fan_in, fan_out):
        bound = 1.0 / math.sqrt(fan_in)
        return jax.random.uniform(kk, (fan_out,), jnp.float32, -bound, bound)

    h0, h1 = hidden_units
    return {
        "w1": kaiming_uniform(k[0], input_features, h0),
        "b1": bias(k[1], input_features, h0),
        "w2": kaiming_uniform(k[2], h0, h1),
        "b2": bias(k[3], h0, h1),
        "w3": default_linear_w(k[4], h1, output_features),
        "b3": bias(k[5], h1, output_features),
        "log_std": jnp.log(jnp.ones((output_features,), jnp.float32) * std_init),
    }


def _reference_forward(x, params):
    f_in = params["w1"].shape[0]
    x2d = x.reshape(-1, f_in).astype(jnp.float32)
    h = jnp.maximum(x2d @ params["w1"] + params["b1"], 0.0)
    h = jnp.maximum(h @ params["w2"] + params["b2"], 0.0)
    return jnp.tanh(h @ params["w3"] + params["b3"]), params["log_std"]


if __name__ == "__main__":
    key = jax.random.PRNGKey(0)
    kx, kp = jax.random.split(key)

    input_features = 16
    output_features = 4
    hidden_units = (32, 32)
    std_init = 0.5

    params = init_params(kp, input_features, output_features, hidden_units, std_init)
    prepped = prepare_params(params)   # one-time padding/casting, hoisted out of the forward

    # Module does x.view(-1, input_features); give a non-flat shape on purpose: (2,4,16) -> (8,16).
    x = jax.random.normal(kx, (2, 4, input_features), jnp.float32)

    mean, log_std = jax.jit(lambda xx: normdist_net_forward(xx, prepped))(x)
    jax.block_until_ready(mean)
    jax.block_until_ready(log_std)

    assert mean.shape == (8, output_features)
    assert log_std.shape == (output_features,)
    assert bool(jnp.all(jnp.abs(mean) <= 1.0))  # tanh range

    # Numerical check vs pure-JAX f32 reference (bf16 weights/activations => loose tolerance).
    ref_mean, ref_log_std = _reference_forward(x, params)
    assert bool(jnp.max(jnp.abs(mean - ref_mean)) < 8e-2)
    assert bool(jnp.all(log_std == ref_log_std))

    print("KERNEL_OK")
</pallas_src>

<mosaic_0001>
module attributes {stable_mosaic.version = 11 : i64} {
  func.func @_normdist_mlp_kernel(%arg0: i32, %arg1: memref<8x16xf32, #tpu.memory_space<vmem>>, %arg2: memref<16x128xbf16, #tpu.memory_space<vmem>>, %arg3: memref<1x128xf32, #tpu.memory_space<vmem>>, %arg4: memref<128x128xbf16, #tpu.memory_space<vmem>>, %arg5: memref<1x128xf32, #tpu.memory_space<vmem>>, %arg6: memref<128x128xbf16, #tpu.memory_space<vmem>>, %arg7: memref<1x128xf32, #tpu.memory_space<vmem>>, %arg8: memref<8x4xf32, #tpu.memory_space<vmem>>) attributes {dimension_semantics = [#tpu.dimension_semantics<parallel>], iteration_bounds = array<i64: 1>, scalar_prefetch = 0 : i64, scratch_operands = 0 : i64, tpu.core_type = #tpu.core_type<tc>, window_params = [{transform_indices = @transform_0, window_bounds = array<i64: 8, 16>}, {pipeline_mode = #tpu.pipeline_mode<synchronous>, transform_indices = @transform_1, window_bounds = array<i64: 16, 128>}, {pipeline_mode = #tpu.pipeline_mode<synchronous>, transform_indices = @transform_2, window_bounds = array<i64: 1, 128>}, {pipeline_mode = #tpu.pipeline_mode<synchronous>, transform_indices = @transform_3, window_bounds = array<i64: 128, 128>}, {pipeline_mode = #tpu.pipeline_mode<synchronous>, transform_indices = @transform_4, window_bounds = array<i64: 1, 128>}, {pipeline_mode = #tpu.pipeline_mode<synchronous>, transform_indices = @transform_5, window_bounds = array<i64: 128, 128>}, {pipeline_mode = #tpu.pipeline_mode<synchronous>, transform_indices = @transform_6, window_bounds = array<i64: 1, 128>}, {transform_indices = @transform_7, window_bounds = array<i64: 8, 4>}]} {
    %c0 = arith.constant 0 : index
    %c0_0 = arith.constant 0 : index
    %0 = vector.load %arg1[%c0, %c0_0] : memref<8x16xf32, #tpu.memory_space<vmem>>, vector<8x16xf32>
    %1 = arith.truncf %0 : vector<8x16xf32> to vector<8x16xbf16>
    %c0_1 = arith.constant 0 : index
    %c0_2 = arith.constant 0 : index
    %2 = vector.load %arg2[%c0_1, %c0_2] : memref<16x128xbf16, #tpu.memory_space<vmem>>, vector<16x128xbf16>
    %cst = arith.constant dense<0.000000e+00> : vector<8x128xf32>
    %3 = tpu.matmul %1, %2, %cst {dimension_numbers = #tpu.dot_dimension_numbers<[1], [0], [0], [1], [0, 0, 1, 1], [], []>} : vector<8x16xbf16>, vector<16x128xbf16>, vector<8x128xf32> -> vector<8x128xf32>
    %c0_3 = arith.constant 0 : index
    %c0_4 = arith.constant 0 : index
    %4 = vector.load %arg3[%c0_3, %c0_4] : memref<1x128xf32, #tpu.memory_space<vmem>>, vector<1x128xf32>
    %5 = vector.broadcast %4 : vector<1x128xf32> to vector<8x128xf32>
    %6 = arith.addf %3, %5 : vector<8x128xf32>
    %cst_5 = arith.constant 0.000000e+00 : f32
    %7 = vector.broadcast %cst_5 : f32 to vector<8x128xf32>
    %8 = arith.maximumf %6, %7 : vector<8x128xf32>
    %9 = arith.truncf %8 : vector<8x128xf32> to vector<8x128xbf16>
    %c0_6 = arith.constant 0 : index
    %c0_7 = arith.constant 0 : index
    %10 = vector.load %arg4[%c0_6, %c0_7] : memref<128x128xbf16, #tpu.memory_space<vmem>>, vector<128x128xbf16>
    %cst_8 = arith.constant dense<0.000000e+00> : vector<8x128xf32>
    %11 = tpu.matmul %9, %10, %cst_8 {dimension_numbers = #tpu.dot_dimension_numbers<[1], [0], [0], [1], [0, 0, 1, 1], [], []>} : vector<8x128xbf16>, vector<128x128xbf16>, vector<8x128xf32> -> vector<8x128xf32>
    %c0_9 = arith.constant 0 : index
    %c0_10 = arith.constant 0 : index
    %12 = vector.load %arg5[%c0_9, %c0_10] : memref<1x128xf32, #tpu.memory_space<vmem>>, vector<1x128xf32>
    %13 = vector.broadcast %12 : vector<1x128xf32> to vector<8x128xf32>
    %14 = arith.addf %11, %13 : vector<8x128xf32>
    %cst_11 = arith.constant 0.000000e+00 : f32
    %15 = vector.broadcast %cst_11 : f32 to vector<8x128xf32>
    %16 = arith.maximumf %14, %15 : vector<8x128xf32>
    %17 = arith.truncf %16 : vector<8x128xf32> to vector<8x128xbf16>
    %c0_12 = arith.constant 0 : index
    %c0_13 = arith.constant 0 : index
    %18 = vector.load %arg6[%c0_12, %c0_13] : memref<128x128xbf16, #tpu.memory_space<vmem>>, vector<128x128xbf16>
    %cst_14 = arith.constant dense<0.000000e+00> : vector<8x128xf32>
    %19 = tpu.matmul %17, %18, %cst_14 {dimension_numbers = #tpu.dot_dimension_numbers<[1], [0], [0], [1], [0, 0, 1, 1], [], []>} : vector<8x128xbf16>, vector<128x128xbf16>, vector<8x128xf32> -> vector<8x128xf32>
    %c0_15 = arith.constant 0 : index
    %c0_16 = arith.constant 0 : index
    %20 = vector.load %arg7[%c0_15, %c0_16] : memref<1x128xf32, #tpu.memory_space<vmem>>, vector<1x128xf32>
    %21 = vector.broadcast %20 : vector<1x128xf32> to vector<8x128xf32>
    %22 = arith.addf %19, %21 : vector<8x128xf32>
    %23 = vector.extract_strided_slice %22 {offsets = [0, 0], sizes = [8, 4], strides = [1, 1]} : vector<8x128xf32> to vector<8x4xf32>
    %24 = math.tanh %23 : vector<8x4xf32>
    %c0_17 = arith.constant 0 : index
    %c0_18 = arith.constant 0 : index
    %25 = vector.load %arg8[%c0_17, %c0_18] : memref<8x4xf32, #tpu.memory_space<vmem>>, vector<8x4xf32>
    tpu.vector_store %arg8[%c0_17, %c0_18], %24 {strides = array<i32>} : memref<8x4xf32, #tpu.memory_space<vmem>>, vector<8x4xf32>,
    return
  }
  func.func @transform_0(%arg0: i32) -> (i32, i32) {
    %c0_i32 = arith.constant 0 : i32
    %c0_i32_0 = arith.constant 0 : i32
    return %arg0, %c0_i32 : i32, i32
  }
  func.func @transform_1(%arg0: i32) -> (i32, i32) {
    %c0_i32 = arith.constant 0 : i32
    %c0_i32_0 = arith.constant 0 : i32
    %c0_i32_1 = arith.constant 0 : i32
    return %c0_i32, %c0_i32_0 : i32, i32
  }
  func.func @transform_2(%arg0: i32) -> (i32, i32) {
    %c0_i32 = arith.constant 0 : i32
    %c0_i32_0 = arith.constant 0 : i32
    %c0_i32_1 = arith.constant 0 : i32
    return %c0_i32, %c0_i32_0 : i32, i32
  }
  func.func @transform_3(%arg0: i32) -> (i32, i32) {
    %c0_i32 = arith.constant 0 : i32
    %c0_i32_0 = arith.constant 0 : i32
    %c0_i32_1 = arith.constant 0 : i32
    return %c0_i32, %c0_i32_0 : i32, i32
  }
  func.func @transform_4(%arg0: i32) -> (i32, i32) {
    %c0_i32 = arith.constant 0 : i32
    %c0_i32_0 = arith.constant 0 : i32
    %c0_i32_1 = arith.constant 0 : i32
    return %c0_i32, %c0_i32_0 : i32, i32
  }
  func.func @transform_5(%arg0: i32) -> (i32, i32) {
    %c0_i32 = arith.constant 0 : i32
    %c0_i32_0 = arith.constant 0 : i32
    %c0_i32_1 = arith.constant 0 : i32
    return %c0_i32, %c0_i32_0 : i32, i32
  }
  func.func @transform_6(%arg0: i32) -> (i32, i32) {
    %c0_i32 = arith.constant 0 : i32
    %c0_i32_0 = arith.constant 0 : i32
    %c0_i32_1 = arith.constant 0 : i32
    return %c0_i32, %c0_i32_0 : i32, i32
  }
  func.func @transform_7(%arg0: i32) -> (i32, i32) {
    %c0_i32 = arith.constant 0 : i32
    %c0_i32_0 = arith.constant 0 : i32
    return %arg0, %c0_i32 : i32, i32
  }
}

</mosaic_0001>

<bundles_post_ra>
// kernel: _lambda_.1
= control target key start
LH: loop header
LB: loop body
LE: loop exit
PB: predicated region body
PF: predicated region fallthrough
CT: control target
= control target key end

     0   :  { %12 = vsyncpa [#allocation3], 0  ;;  %s564_s0 = inlined_call_operand.hbm [shape: f32[8,16], index: 0, kind: input, shape index: {}]   ;;  %s565_s1 = inlined_call_operand.hbm [shape: bf16[16,128], index: 1, kind: input, shape index: {}]   ;;  %s566_s2 = inlined_call_operand.vmem [shape: f32[1,128], index: 2, kind: input, shape index: {}]   ;;  %s567_s3 = inlined_call_operand.hbm [shape: bf16[128,128], index: 3, kind: input, shape index: {}]   ;;  %s568_s4 = inlined_call_operand.vmem [shape: f32[1,128], index: 4, kind: input, shape index: {}]   ;;  %s569_s5 = inlined_call_operand.hbm [shape: bf16[128,128], index: 5, kind: input, shape index: {}]   ;;  %s570_s6 = inlined_call_operand.vmem [shape: f32[1,128], index: 6, kind: input, shape index: {}]   ;;  %s571_s7 = inlined_call_operand.vmem [shape: f32[8,4], index: 7, kind: output, shape index: {}]  }
   0x1   :  { %13 = vsyncpa [#allocation5], 0  ;;  %s30_s26 = sshll.u32 %s565_s1, 4  ;;  %s31_s26 = int_to_ptr.hbm [resolvable:$true] %s30_s26 }
   0x2   :  { %14 = vsyncpa [#allocation8], 0  ;;  %s494_s27 = smov [#allocation4]   ;;  %s20_s8 = sshll.u32 %s564_s0, 4  ;;  %s21_s8 = int_to_ptr.hbm [resolvable:$true] %s20_s8 }
   0x3   :  { %s32_s28 = sshll.u32 %s494_s27, 4  ;;  %s495_s9 = smov 64   ;;  %s33_s28 = int_to_ptr.vmem [resolvable:$true] %s32_s28 }
   0x4   :  { %s496_s10 = smov 4   ;;  %s497_s11 = smov [#allocation2]  }
   0x5   :  { %38 = dma.hbm_to_vmem [thread:$0]  %s31_s26, 128, %s33_s28, [#allocation5], %s495_s9, %s495_s9, %s496_s10  }
   0x6   :  { %s22_s12 = sshll.u32 %s497_s11, 4  ;;  %s45_s15 = sshll.u32 %s567_s3, 4  ;;  %s23_s12 = int_to_ptr.vmem [resolvable:$true] %s22_s12  ;;  %s46_s15 = int_to_ptr.hbm [resolvable:$true] %s45_s15 }
   0x7   :  { %25 = dma.hbm_to_vmem [thread:$0]  %s21_s8, 128, %s23_s12, [#allocation3]  }
   0x8   :  { %s60_s17 = sshll.u32 %s569_s5, 4  ;;  %s498_s18 = smov [#allocation6]   ;;  %s61_s17 = int_to_ptr.hbm [resolvable:$true] %s60_s17 }
   0x9   :  { %s47_s19 = sshll.u32 %s498_s18, 4  ;;  %s499_s0 = smov [#allocation7]   ;;  %s48_s19 = int_to_ptr.vmem [resolvable:$true] %s47_s19 }
   0xa   :  { %53 = dma.hbm_to_vmem [thread:$0]  %s46_s15, 1024, %s48_s19, [#allocation5], %s495_s9, %s495_s9, %s496_s10  }
   0xb   :  { %s62_s20 = sshll.u32 %s499_s0, 4  ;;  %s63_s20 = int_to_ptr.vmem [resolvable:$true] %s62_s20 }
   0xc   :  { %68 = dma.hbm_to_vmem [thread:$0]  %s61_s17, 1024, %s63_s20, [#allocation8], %s495_s9, %s495_s9, %s496_s10  }
   0xd   :  { %488 = dma.done.wait [#allocation3], 128  }
   0xe   :  { %489 = vsyncadd [#allocation3], 4294967168 }
   0xf   :  { %490 = dma.done.wait [#allocation5], 1152  }
  0x10   :  { %491 = vsyncadd [#allocation5], 4294966144 }
  0x11   :  { %492 = dma.done.wait [#allocation8], 1024  }
  0x12   :  { %493 = vsyncadd [#allocation8], 4294966272  ;;  %v364_v0 = vld [vmem:[#allocation4] sm:$0xff]  ;;  %v88_v1 = vld [vmem:[#allocation2] sm:$0xff]  ;;  %vm102_vm0 = vcmask 130048   ;;  %vm286_vm1 = vcmask 31744  }
  0x13   :  { %v372_v2 = vld [vmem:[#allocation6 + $0x38] sm:$0xff]  ;;  %v89_v3 = vpack.c.bf16 %v88_v1, %v88_v1  ;;  %113 = vmatpush.bf16.msra.mxu0 %v364_v0  ;;  %v371_v4 = vld [vmem:[#allocation6 + $0x30] sm:$0xff]  ;;  %v370_v5 = vld [vmem:[#allocation6 + $0x28] sm:$0xff] }
  0x14   :  { %189 = vmatpush.bf16.msra.mxu1 %v372_v2  ;;  %v369_v6 = vld [vmem:[#allocation6 + $0x20] sm:$0xff]  ;;  %v368_v7 = vld [vmem:[#allocation6 + $0x18] sm:$0xff]  ;;  %v367_v8 = vld [vmem:[#allocation6 + $0x10] sm:$0xff] }
  0x15   :  { %v366_v9 = vld [vmem:[#allocation6 + $0x8] sm:$0xff]  ;;  %v365_v10 = vld [vmem:[#allocation6] sm:$0xff]  ;;  %v380_v11 = vld [vmem:[#allocation7 + $0x38] sm:$0xff] }
  0x16   :  { %299 = vmatmul.msk.bf16.vlgmr.msra.gmra.mxu0 %vm102_vm0, %v89_v3  ;;  %272 = vmatpush.bf16.msra.mxu2 %v380_v11  ;;  %v379_v12 = vld [vmem:[#allocation7 + $0x30] sm:$0xff]  ;;  %v378_v13 = vld [vmem:[#allocation7 + $0x28] sm:$0xff]  ;;  %v377_v14 = vld [vmem:[#allocation7 + $0x20] sm:$0xff] }
  0x17   :  { %v376_v15 = vld [vmem:[#allocation7 + $0x18] sm:$0xff]  ;;  %v375_v16 = vld [vmem:[#allocation7 + $0x10] sm:$0xff]  ;;  %v374_v23 = vld [vmem:[#allocation7 + $0x8] sm:$0xff] }
  0x18   :  { %190 = vmatpush.bf16.msra.mxu1 %v371_v4  ;;  %v387_v17 = vld [vmem:[%s566_s2] ss:$0 sm:$0xff]  ;;  %v373_v24 = vld [vmem:[#allocation7] sm:$0xff] }
  0x19   :  { %v388_v25 = vld [vmem:[%s568_s4] ss:$0 sm:$0xff] }
  0x1a   :  { %273 = vmatpush.bf16.msra.mxu2 %v379_v12  ;;  %v389_v31 = vld [vmem:[%s570_s6] ss:$0 sm:$0xff] }
  0x1c   :  { %191 = vmatpush.bf16.msra.mxu1 %v370_v5 }
  0x1e   :  { %274 = vmatpush.bf16.msra.mxu2 %v378_v13 }
  0x20   :  { %192 = vmatpush.bf16.msra.mxu1 %v369_v6 }
  0x22   :  { %275 = vmatpush.bf16.msra.mxu2 %v377_v14 }
  0x24   :  { %193 = vmatpush.bf16.msra.mxu1 %v368_v7 }
  0x26   :  { %276 = vmatpush.bf16.msra.mxu2 %v376_v15 }
  0x28   :  { %194 = vmatpush.bf16.msra.mxu1 %v367_v8 }
  0x2a   :  { %277 = vmatpush.bf16.msra.mxu2 %v375_v16 }
  0x2c   :  { %195 = vmatpush.bf16.msra.mxu1 %v366_v9 }
  0x2e   :  { %278 = vmatpush.bf16.msra.mxu2 %v374_v23 }
  0x30   :  { %196 = vmatpush.bf16.msra.mxu1 %v365_v10 }
  0x32   :  { %279 = vmatpush.bf16.msra.mxu2 %v373_v24 }
  0x93   :  { %v115_v18 = vpop.f32.mrf.mxu0 }
  0x94   :  { %v116_v19 = vadd.f32 %v387_v17, %v115_v18 }
  0x96   :  { %v119_v20 = vmax.f32 %v116_v19, 0.0 }
  0x98   :  { %v120_v21 = vpack.c.bf16 %v119_v20, %v119_v20 }
  0x9a   :  { %197 = vmatmul.bf16.vlgmr.msra.gmra.mxu1 %v120_v21 }
  0x9b   :  { %v117_v22 = vpop.f32.mrf.mxu0 }
 0x117   :  { %v198_v26 = vpop.f32.mrf.mxu1 }
 0x118   :  { %v199_v27 = vadd.f32 %v388_v25, %v198_v26 }
 0x11a   :  { %v202_v28 = vmax.f32 %v199_v27, 0.0 }
 0x11c   :  { %v203_v29 = vpack.c.bf16 %v202_v28, %v202_v28 }
 0x11e   :  { %280 = vmatmul.bf16.vlgmr.msra.gmra.mxu2 %v203_v29 }
 0x11f   :  { %v200_v30 = vpop.f32.mrf.mxu1 }
 0x1a1   :  { %v281_v32 = vpop.f32.mrf.mxu2 }
 0x1a2   :  { %v282_v33 = vadd.f32 %v389_v31, %v281_v32 }
 0x1a4   :  { %390 = vtanh.f32 %v282_v33 }
 0x1a9   :  { %v283_v34 = vpop.f32.mrf.mxu2 }
 0x1aa   :  { %v391_v35 = vpop.eup %390 }
 0x1ab   :  { %287 = vst.msk [vmem:[%s571_s7] sm:$0xff] %vm286_vm1, %v391_v35 }
 0x1ac   :  { %292 = vsyncpa [#allocation3], 1 }
 0x1ad   :  { %293 = vsyncpa [#allocation5], 1 }
 0x1ae   :  { %294 = vsyncpa [#allocation8], 1 }

</bundles_post_ra>
